<compile_context>
chip_gen: v7x
topology: tpu7x:2x2x1
jax: 0.10.0
libtpu: 0.0.40
codegen_flags: <defaults>
</compile_context>

<pallas_src>
import functools
import math

import jax
import jax.numpy as jnp
from jax import lax
from jax.experimental import pallas as pl
from jax.experimental.pallas import tpu as pltpu


def _round_up(x, m):
    return (x + m - 1) // m * m


def _pick_unroll(n, target=8):
    """Pick an unroll factor that divides the (static) trip count."""
    if n <= 0:
        return 1
    for u in (target, 4, 2):
        if n % u == 0:
            return u
    return 1


def _positional_encoding(seq_len, d_model):
    """Same semantics as PositionalEncoding.forward for one sequence: [S, D] f32."""
    pos = jnp.arange(seq_len, dtype=jnp.float32)[:, None]
    idx = jnp.arange(d_model, dtype=jnp.int32)[None, :]
    angle_rates = jnp.power(
        jnp.float32(10000.0),
        (2.0 * (idx // 2).astype(jnp.float32)) / jnp.float32(d_model))
    angles = pos / angle_rates
    return jnp.where(idx % 2 == 0, jnp.sin(angles), jnp.cos(angles))


# --------------------------------------------------------------------------------------
# Kernel A: embedding table resident in VMEM (constant index_map -> copied once).
# --------------------------------------------------------------------------------------
def _embedding_kernel_resident(tok_ref, table_ref, pe_ref, o_ref, *, tile_s, scale):
    """Per grid step (b, s): gather tile_s rows from the resident table, scale, add PE.

    tok_ref   : [B, S_pad] int32 in SMEM (scalar prefetch)
    table_ref : [V, D] VMEM (resident across grid steps)
    pe_ref    : [tile_s, D] f32 VMEM (auto-pipelined PE tile, indexed by s only)
    o_ref     : [tile_s, D] f32 output tile (batch dim squeezed)
    """
    b = pl.program_id(0)
    s = pl.program_id(1)
    base = s * tile_s
    scale_f = jnp.float32(scale)

    def body(j, carry):
        row = tok_ref[b, base + j]                                   # SMEM scalar read
        vec = table_ref[pl.ds(row, 1), :].astype(jnp.float32)        # (1, D) dynamic row
        o_ref[pl.ds(j, 1), :] = vec * scale_f + pe_ref[pl.ds(j, 1), :]
        return carry

    lax.fori_loop(0, tile_s, body, 0, unroll=_pick_unroll(tile_s))


# --------------------------------------------------------------------------------------
# Kernel B: large-vocabulary path — table in HBM, rolling-window row-DMA gather.
# --------------------------------------------------------------------------------------
def _embedding_kernel_dma(tok_ref, table_ref, pe_ref, o_ref, stage_ref, sems,
                          *, tile_s, depth, scale):
    """tok_ref: [B, S_pad] SMEM; table_ref: [V, D] HBM; stage_ref: [tile_s, D] VMEM."""
    b = pl.program_id(0)
    s = pl.program_id(1)
    base = s * tile_s

    def issue(j, row):
        pltpu.make_async_copy(
            table_ref.at[pl.ds(row, 1), :],
            stage_ref.at[pl.ds(j, 1), :],
            sems.at[j % depth],
        ).start()

    def wait(j):
        # Source slice is only used for the byte count of the wait descriptor.
        pltpu.make_async_copy(
            table_ref.at[pl.ds(0, 1), :],
            stage_ref.at[pl.ds(j, 1), :],
            sems.at[j % depth],
        ).wait()

    nprime = min(depth, tile_s)

    def prime(j, c):
        row = tok_ref[b, base + j]
        issue(j, row)
        return c
    lax.fori_loop(0, nprime, prime, 0, unroll=_pick_unroll(nprime))

    if tile_s > depth:
        def roll(j, c):
            row = tok_ref[b, base + j]      # read SMEM BEFORE wait (sst->sld forwarding)
            wait(j - depth)
            issue(j, row)
            return c
        lax.fori_loop(depth, tile_s, roll, 0, unroll=_pick_unroll(tile_s - depth))

    def drain(j, c):
        wait(j)
        return c
    lax.fori_loop(tile_s - nprime, tile_s, drain, 0, unroll=_pick_unroll(nprime))

    o_ref[...] = stage_ref[...].astype(jnp.float32) * jnp.float32(scale) + pe_ref[...]


# --------------------------------------------------------------------------------------
# Wrapper
# --------------------------------------------------------------------------------------
def _choose_tile_s(S, D, max_rows=1024, tile_bytes_budget=12 << 20):
    """Pick rows-per-step: big enough to amortize step overhead, small enough for v7x VMEM."""
    cap = max(8, min(max_rows, tile_bytes_budget // (5 * D * 4)))
    if S <= cap:
        return S, S                       # full-dim block is always layout-legal
    t = (cap // 8) * 8
    tt = t
    while tt >= 8:                        # prefer a multiple-of-8 tile that divides S
        if S % tt == 0:
            return tt, S
        tt -= 8
    return t, _round_up(S, t)             # otherwise pad S (sliced off afterwards)


def embedding_forward(x, emb_table, *, table_vmem_budget=8 << 20,
                      max_tile_rows=1024, max_inflight=64):
    """x: int32 [B, S]; emb_table: float32 [V, D] -> float32 [B, S, D]."""
    B, S = x.shape
    V, D = emb_table.shape

    tile_s, S_pad = _choose_tile_s(S, D, max_rows=max_tile_rows)
    pad = S_pad - S

    # Token ids: clamp to keep gathers in-bounds; pad with a valid id (rows sliced off).
    tok = jnp.clip(x.astype(jnp.int32), 0, V - 1)
    if pad:
        tok = jnp.pad(tok, ((0, 0), (0, pad)))

    # Single [S_pad, D] positional-encoding table (no B-times tiling).
    pe = _positional_encoding(S_pad, D)

    scale = math.sqrt(D)
    resident = (V * D * emb_table.dtype.itemsize) <= table_vmem_budget
    grid = (B, S_pad // tile_s)

    pe_spec = pl.BlockSpec((tile_s, D), lambda b, s, tok: (s, 0))
    out_spec = pl.BlockSpec((None, tile_s, D), lambda b, s, tok: (b, s, 0))

    if resident:
        kernel = functools.partial(_embedding_kernel_resident, tile_s=tile_s, scale=scale)
        table_spec = pl.BlockSpec((V, D), lambda b, s, tok: (0, 0))   # resident in VMEM
        scratch = []
        vmem_est = V * D * emb_table.dtype.itemsize + 4 * tile_s * D * 4
    else:
        depth = min(max_inflight, tile_s)
        kernel = functools.partial(_embedding_kernel_dma, tile_s=tile_s,
                                   depth=depth, scale=scale)
        table_spec = pl.BlockSpec(memory_space=pl.ANY)                # stays in HBM
        scratch = [
            pltpu.VMEM((tile_s, D), emb_table.dtype),                 # gather staging
            pltpu.SemaphoreType.DMA((depth,)),                        # rolling DMA window
        ]
        vmem_est = 5 * tile_s * D * 4

    vmem_limit = int(min(max(2 * vmem_est, 16 << 20), 64 << 20))

    out = pl.pallas_call(
        kernel,
        out_shape=jax.ShapeDtypeStruct((B, S_pad, D), jnp.float32),
        grid_spec=pltpu.PrefetchScalarGridSpec(
            num_scalar_prefetch=1,                                    # token ids -> SMEM
            grid=grid,
            in_specs=[table_spec, pe_spec],
            out_specs=out_spec,
            scratch_shapes=scratch,
        ),
        compiler_params=pltpu.CompilerParams(
            dimension_semantics=("parallel", "parallel"),
            vmem_limit_bytes=vmem_limit,
        ),
    )(tok, emb_table, pe)

    if pad:
        out = out[:, :S, :]
    return out


def _reference(x, emb_table):
    _, S = x.shape
    _, D = emb_table.shape
    emb = emb_table[x] * math.sqrt(D)
    pe = _positional_encoding(S, D)
    return emb + pe[None, :, :]


if __name__ == "__main__":
    # Small shapes consistent with the module's forward
    B, S = 2, 8
    vocab_size, d_model = 32, 32
    padding_idx = 0

    key = jax.random.PRNGKey(0)
    k_w, k_x = jax.random.split(key)

    # nn.init.normal_(weight, mean=0, std=d_model ** -0.5); weight[padding_idx] = 0
    emb_table = jax.random.normal(k_w, (vocab_size, d_model), dtype=jnp.float32)
    emb_table = emb_table * (d_model ** -0.5)
    emb_table = emb_table.at[padding_idx].set(0.0)

    x = jax.random.randint(k_x, (B, S), 0, vocab_size, dtype=jnp.int32)

    out = embedding_forward(x, emb_table)
    out = jax.block_until_ready(out)

    ref = _reference(x, emb_table)
    assert out.shape == (B, S, d_model)
    assert jnp.allclose(out, ref, atol=1e-4, rtol=1e-4), "mismatch vs reference"

    print("KERNEL_OK")
</pallas_src>

<mosaic_0001>
module attributes {stable_mosaic.version = 11 : i64} {
  func.func @_embedding_kernel_resident(%arg0: i32, %arg1: i32, %arg2: memref<2x8xi32, #tpu.memory_space<smem>>, %arg3: memref<32x32xf32, #tpu.memory_space<vmem>>, %arg4: memref<8x32xf32, #tpu.memory_space<vmem>>, %arg5: memref<1x8x32xf32, #tpu.memory_space<vmem>>) attributes {dimension_semantics = [#tpu.dimension_semantics<parallel>, #tpu.dimension_semantics<parallel>], iteration_bounds = array<i64: 2, 1>, scalar_prefetch = 1 : i64, scratch_operands = 0 : i64, tpu.core_type = #tpu.core_type<tc>, window_params = [{pipeline_mode = #tpu.pipeline_mode<synchronous>, transform_indices = @transform_0, window_bounds = array<i64: 32, 32>}, {transform_indices = @transform_1, window_bounds = array<i64: 8, 32>}, {transform_indices = @transform_2, window_bounds = array<i64: 1, 8, 32>}]} {
    %c8_i32 = arith.constant 8 : i32
    %0 = arith.muli %arg1, %c8_i32 : i32
    %cst = arith.constant 5.65685415 : f32
    %c0_i32 = arith.constant 0 : i32
    %1 = arith.addi %0, %c0_i32 : i32
    %2 = arith.index_cast %arg0 : i32 to index
    %3 = arith.index_cast %1 : i32 to index
    %4 = memref.load %arg2[%2, %3] : memref<2x8xi32, #tpu.memory_space<smem>>
    %5 = arith.index_cast %4 : i32 to index
    %c0 = arith.constant 0 : index
    %6 = vector.load %arg3[%5, %c0] : memref<32x32xf32, #tpu.memory_space<vmem>>, vector<1x32xf32>
    %7 = vector.broadcast %cst : f32 to vector<1x32xf32>
    %8 = arith.mulf %6, %7 : vector<1x32xf32>
    %9 = arith.index_cast %c0_i32 : i32 to index
    %c0_0 = arith.constant 0 : index
    %10 = vector.load %arg4[%9, %c0_0] : memref<8x32xf32, #tpu.memory_space<vmem>>, vector<1x32xf32>
    %11 = arith.addf %8, %10 : vector<1x32xf32>
    %c0_1 = arith.constant 0 : index
    %12 = arith.index_cast %c0_i32 : i32 to index
    %c0_2 = arith.constant 0 : index
    %13 = vector.load %arg5[%c0_1, %12, %c0_2] : memref<1x8x32xf32, #tpu.memory_space<vmem>>, vector<1x1x32xf32>
    %14 = vector.shape_cast %13 : vector<1x1x32xf32> to vector<1x32xf32>
    %15 = vector.shape_cast %11 : vector<1x32xf32> to vector<1x1x32xf32>
    tpu.vector_store %arg5[%c0_1, %12, %c0_2], %15 {strides = array<i32>} : memref<1x8x32xf32, #tpu.memory_space<vmem>>, vector<1x1x32xf32>,
    %c1_i32 = arith.constant 1 : i32
    %16 = arith.addi %0, %c1_i32 : i32
    %17 = arith.index_cast %arg0 : i32 to index
    %18 = arith.index_cast %16 : i32 to index
    %19 = memref.load %arg2[%17, %18] : memref<2x8xi32, #tpu.memory_space<smem>>
    %20 = arith.index_cast %19 : i32 to index
    %c0_3 = arith.constant 0 : index
    %21 = vector.load %arg3[%20, %c0_3] : memref<32x32xf32, #tpu.memory_space<vmem>>, vector<1x32xf32>
    %22 = vector.broadcast %cst : f32 to vector<1x32xf32>
    %23 = arith.mulf %21, %22 : vector<1x32xf32>
    %24 = arith.index_cast %c1_i32 : i32 to index
    %c0_4 = arith.constant 0 : index
    %25 = vector.load %arg4[%24, %c0_4] : memref<8x32xf32, #tpu.memory_space<vmem>>, vector<1x32xf32>
    %26 = arith.addf %23, %25 : vector<1x32xf32>
    %c0_5 = arith.constant 0 : index
    %27 = arith.index_cast %c1_i32 : i32 to index
    %c0_6 = arith.constant 0 : index
    %28 = vector.load %arg5[%c0_5, %27, %c0_6] : memref<1x8x32xf32, #tpu.memory_space<vmem>>, vector<1x1x32xf32>
    %29 = vector.shape_cast %28 : vector<1x1x32xf32> to vector<1x32xf32>
    %30 = vector.shape_cast %26 : vector<1x32xf32> to vector<1x1x32xf32>
    tpu.vector_store %arg5[%c0_5, %27, %c0_6], %30 {strides = array<i32>} : memref<1x8x32xf32, #tpu.memory_space<vmem>>, vector<1x1x32xf32>,
    %c2_i32 = arith.constant 2 : i32
    %31 = arith.addi %0, %c2_i32 : i32
    %32 = arith.index_cast %arg0 : i32 to index
    %33 = arith.index_cast %31 : i32 to index
    %34 = memref.load %arg2[%32, %33] : memref<2x8xi32, #tpu.memory_space<smem>>
    %35 = arith.index_cast %34 : i32 to index
    %c0_7 = arith.constant 0 : index
    %36 = vector.load %arg3[%35, %c0_7] : memref<32x32xf32, #tpu.memory_space<vmem>>, vector<1x32xf32>
    %37 = vector.broadcast %cst : f32 to vector<1x32xf32>
    %38 = arith.mulf %36, %37 : vector<1x32xf32>
    %39 = arith.index_cast %c2_i32 : i32 to index
    %c0_8 = arith.constant 0 : index
    %40 = vector.load %arg4[%39, %c0_8] : memref<8x32xf32, #tpu.memory_space<vmem>>, vector<1x32xf32>
    %41 = arith.addf %38, %40 : vector<1x32xf32>
    %c0_9 = arith.constant 0 : index
    %42 = arith.index_cast %c2_i32 : i32 to index
    %c0_10 = arith.constant 0 : index
    %43 = vector.load %arg5[%c0_9, %42, %c0_10] : memref<1x8x32xf32, #tpu.memory_space<vmem>>, vector<1x1x32xf32>
    %44 = vector.shape_cast %43 : vector<1x1x32xf32> to vector<1x32xf32>
    %45 = vector.shape_cast %41 : vector<1x32xf32> to vector<1x1x32xf32>
    tpu.vector_store %arg5[%c0_9, %42, %c0_10], %45 {strides = array<i32>} : memref<1x8x32xf32, #tpu.memory_space<vmem>>, vector<1x1x32xf32>,
    %c3_i32 = arith.constant 3 : i32
    %46 = arith.addi %0, %c3_i32 : i32
    %47 = arith.index_cast %arg0 : i32 to index
    %48 = arith.index_cast %46 : i32 to index
    %49 = memref.load %arg2[%47, %48] : memref<2x8xi32, #tpu.memory_space<smem>>
    %50 = arith.index_cast %49 : i32 to index
    %c0_11 = arith.constant 0 : index
    %51 = vector.load %arg3[%50, %c0_11] : memref<32x32xf32, #tpu.memory_space<vmem>>, vector<1x32xf32>
    %52 = vector.broadcast %cst : f32 to vector<1x32xf32>
    %53 = arith.mulf %51, %52 : vector<1x32xf32>
    %54 = arith.index_cast %c3_i32 : i32 to index
    %c0_12 = arith.constant 0 : index
    %55 = vector.load %arg4[%54, %c0_12] : memref<8x32xf32, #tpu.memory_space<vmem>>, vector<1x32xf32>
    %56 = arith.addf %53, %55 : vector<1x32xf32>
    %c0_13 = arith.constant 0 : index
    %57 = arith.index_cast %c3_i32 : i32 to index
    %c0_14 = arith.constant 0 : index
    %58 = vector.load %arg5[%c0_13, %57, %c0_14] : memref<1x8x32xf32, #tpu.memory_space<vmem>>, vector<1x1x32xf32>
    %59 = vector.shape_cast %58 : vector<1x1x32xf32> to vector<1x32xf32>
    %60 = vector.shape_cast %56 : vector<1x32xf32> to vector<1x1x32xf32>
    tpu.vector_store %arg5[%c0_13, %57, %c0_14], %60 {strides = array<i32>} : memref<1x8x32xf32, #tpu.memory_space<vmem>>, vector<1x1x32xf32>,
    %c4_i32 = arith.constant 4 : i32
    %61 = arith.addi %0, %c4_i32 : i32
    %62 = arith.index_cast %arg0 : i32 to index
    %63 = arith.index_cast %61 : i32 to index
    %64 = memref.load %arg2[%62, %63] : memref<2x8xi32, #tpu.memory_space<smem>>
    %65 = arith.index_cast %64 : i32 to index
    %c0_15 = arith.constant 0 : index
    %66 = vector.load %arg3[%65, %c0_15] : memref<32x32xf32, #tpu.memory_space<vmem>>, vector<1x32xf32>
    %67 = vector.broadcast %cst : f32 to vector<1x32xf32>
    %68 = arith.mulf %66, %67 : vector<1x32xf32>
    %69 = arith.index_cast %c4_i32 : i32 to index
    %c0_16 = arith.constant 0 : index
    %70 = vector.load %arg4[%69, %c0_16] : memref<8x32xf32, #tpu.memory_space<vmem>>, vector<1x32xf32>
    %71 = arith.addf %68, %70 : vector<1x32xf32>
    %c0_17 = arith.constant 0 : index
    %72 = arith.index_cast %c4_i32 : i32 to index
    %c0_18 = arith.constant 0 : index
    %73 = vector.load %arg5[%c0_17, %72, %c0_18] : memref<1x8x32xf32, #tpu.memory_space<vmem>>, vector<1x1x32xf32>
    %74 = vector.shape_cast %73 : vector<1x1x32xf32> to vector<1x32xf32>
    %75 = vector.shape_cast %71 : vector<1x32xf32> to vector<1x1x32xf32>
    tpu.vector_store %arg5[%c0_17, %72, %c0_18], %75 {strides = array<i32>} : memref<1x8x32xf32, #tpu.memory_space<vmem>>, vector<1x1x32xf32>,
    %c5_i32 = arith.constant 5 : i32
    %76 = arith.addi %0, %c5_i32 : i32
    %77 = arith.index_cast %arg0 : i32 to index
    %78 = arith.index_cast %76 : i32 to index
    %79 = memref.load %arg2[%77, %78] : memref<2x8xi32, #tpu.memory_space<smem>>
    %80 = arith.index_cast %79 : i32 to index
    %c0_19 = arith.constant 0 : index
    %81 = vector.load %arg3[%80, %c0_19] : memref<32x32xf32, #tpu.memory_space<vmem>>, vector<1x32xf32>
    %82 = vector.broadcast %cst : f32 to vector<1x32xf32>
    %83 = arith.mulf %81, %82 : vector<1x32xf32>
    %84 = arith.index_cast %c5_i32 : i32 to index
    %c0_20 = arith.constant 0 : index
    %85 = vector.load %arg4[%84, %c0_20] : memref<8x32xf32, #tpu.memory_space<vmem>>, vector<1x32xf32>
    %86 = arith.addf %83, %85 : vector<1x32xf32>
    %c0_21 = arith.constant 0 : index
    %87 = arith.index_cast %c5_i32 : i32 to index
    %c0_22 = arith.constant 0 : index
    %88 = vector.load %arg5[%c0_21, %87, %c0_22] : memref<1x8x32xf32, #tpu.memory_space<vmem>>, vector<1x1x32xf32>
    %89 = vector.shape_cast %88 : vector<1x1x32xf32> to vector<1x32xf32>
    %90 = vector.shape_cast %86 : vector<1x32xf32> to vector<1x1x32xf32>
    tpu.vector_store %arg5[%c0_21, %87, %c0_22], %90 {strides = array<i32>} : memref<1x8x32xf32, #tpu.memory_space<vmem>>, vector<1x1x32xf32>,
    %c6_i32 = arith.constant 6 : i32
    %91 = arith.addi %0, %c6_i32 : i32
    %92 = arith.index_cast %arg0 : i32 to index
    %93 = arith.index_cast %91 : i32 to index
    %94 = memref.load %arg2[%92, %93] : memref<2x8xi32, #tpu.memory_space<smem>>
    %95 = arith.index_cast %94 : i32 to index
    %c0_23 = arith.constant 0 : index
    %96 = vector.load %arg3[%95, %c0_23] : memref<32x32xf32, #tpu.memory_space<vmem>>, vector<1x32xf32>
    %97 = vector.broadcast %cst : f32 to vector<1x32xf32>
    %98 = arith.mulf %96, %97 : vector<1x32xf32>
    %99 = arith.index_cast %c6_i32 : i32 to index
    %c0_24 = arith.constant 0 : index
    %100 = vector.load %arg4[%99, %c0_24] : memref<8x32xf32, #tpu.memory_space<vmem>>, vector<1x32xf32>
    %101 = arith.addf %98, %100 : vector<1x32xf32>
    %c0_25 = arith.constant 0 : index
    %102 = arith.index_cast %c6_i32 : i32 to index
    %c0_26 = arith.constant 0 : index
    %103 = vector.load %arg5[%c0_25, %102, %c0_26] : memref<1x8x32xf32, #tpu.memory_space<vmem>>, vector<1x1x32xf32>
    %104 = vector.shape_cast %103 : vector<1x1x32xf32> to vector<1x32xf32>
    %105 = vector.shape_cast %101 : vector<1x32xf32> to vector<1x1x32xf32>
    tpu.vector_store %arg5[%c0_25, %102, %c0_26], %105 {strides = array<i32>} : memref<1x8x32xf32, #tpu.memory_space<vmem>>, vector<1x1x32xf32>,
    %c7_i32 = arith.constant 7 : i32
    %106 = arith.addi %0, %c7_i32 : i32
    %107 = arith.index_cast %arg0 : i32 to index
    %108 = arith.index_cast %106 : i32 to index
    %109 = memref.load %arg2[%107, %108] : memref<2x8xi32, #tpu.memory_space<smem>>
    %110 = arith.index_cast %109 : i32 to index
    %c0_27 = arith.constant 0 : index
    %111 = vector.load %arg3[%110, %c0_27] : memref<32x32xf32, #tpu.memory_space<vmem>>, vector<1x32xf32>
    %112 = vector.broadcast %cst : f32 to vector<1x32xf32>
    %113 = arith.mulf %111, %112 : vector<1x32xf32>
    %114 = arith.index_cast %c7_i32 : i32 to index
    %c0_28 = arith.constant 0 : index
    %115 = vector.load %arg4[%114, %c0_28] : memref<8x32xf32, #tpu.memory_space<vmem>>, vector<1x32xf32>
    %116 = arith.addf %113, %115 : vector<1x32xf32>
    %c0_29 = arith.constant 0 : index
    %117 = arith.index_cast %c7_i32 : i32 to index
    %c0_30 = arith.constant 0 : index
    %118 = vector.load %arg5[%c0_29, %117, %c0_30] : memref<1x8x32xf32, #tpu.memory_space<vmem>>, vector<1x1x32xf32>
    %119 = vector.shape_cast %118 : vector<1x1x32xf32> to vector<1x32xf32>
    %120 = vector.shape_cast %116 : vector<1x32xf32> to vector<1x1x32xf32>
    tpu.vector_store %arg5[%c0_29, %117, %c0_30], %120 {strides = array<i32>} : memref<1x8x32xf32, #tpu.memory_space<vmem>>, vector<1x1x32xf32>,
    %c8_i32_31 = arith.constant 8 : i32
    return
  }
  func.func @transform_0(%arg0: i32, %arg1: i32, %arg2: memref<2x8xi32, #tpu.memory_space<smem>>) -> (i32, i32) {
    %c0_i32 = arith.constant 0 : i32
    %c0_i32_0 = arith.constant 0 : i32
    %c0_i32_1 = arith.constant 0 : i32
    return %c0_i32, %c0_i32_0 : i32, i32
  }
  func.func @transform_1(%arg0: i32, %arg1: i32, %arg2: memref<2x8xi32, #tpu.memory_space<smem>>) -> (i32, i32) {
    %c0_i32 = arith.constant 0 : i32
    %c0_i32_0 = arith.constant 0 : i32
    return %arg1, %c0_i32 : i32, i32
  }
  func.func @transform_2(%arg0: i32, %arg1: i32, %arg2: memref<2x8xi32, #tpu.memory_space<smem>>) -> (i32, i32, i32) {
    %c0_i32 = arith.constant 0 : i32
    %c0_i32_0 = arith.constant 0 : i32
    return %arg0, %arg1, %c0_i32 : i32, i32, i32
  }
}

</mosaic_0001>

<bundles_post_ra>
// kernel: tpu_custom_call.1
= control target key start
LH: loop header
LB: loop body
LE: loop exit
PB: predicated region body
PF: predicated region fallthrough
CT: control target
= control target key end

     0   :  { %s913_s0 = inlined_call_operand.hbm [shape: s32[2,8], index: 0, kind: input, shape index: {}]   ;;  %s914_s1 = inlined_call_operand.hbm [shape: f32[32,32], index: 1, kind: input, shape index: {}]   ;;  %s915_s2 = inlined_call_operand.hbm [shape: f32[8,32], index: 2, kind: input, shape index: {}]   ;;  %s916_s3 = inlined_call_operand.hbm [shape: f32[2,8,32], index: 3, kind: output, shape index: {}]  }
   0x1   :  { %s500_s14 = scalar_lea.hbm %s913_s0, 32 }
   0x2   :  { %p501_p0 = scmp.ne.s32.totalorder %s913_s0, %s500_s14  ;;  %p504_p1 = scmp.lt.u32.totalorder %s500_s14, %s913_s0 }
   0x4   :  { %p506_p2 = pnand %p504_p1, %p501_p0 }
   0x6   :  { %509 = shalt.err (!%p506_p2)  }
   0x7   :  { %s656_s19 = smov [#allocation3]  }
   0x8   :  { %9 = dma.hbm_to_smem %s913_s0, 32, %s656_s19, [#allocation2] }
   0x9   :  { %618 = dma.done.wait [#allocation2], 32 }
   0xa   :  { %619 = vsyncadd [#allocation2], 4294967264 }
   0xb   :  { %11 = sfence }
   0xc   :  { %12 = vsyncpa [#allocation5], 0 }
   0xd   :  { %13 = vsyncpa [#allocation8], 0 }
   0xe   :  { %14 = vsyncpa [#allocation6], 0 }
   0xf   :  { %16 = vsyncpa [#allocation6 + $0x1], 0  ;;  %s694_s22 = smov 0   ;;  %s696_s23 = smov 0  }
  0x10   :  { %s698_s24 = smov 0   ;;  %s700_s25 = smov 0  }
  0x11   :  { %s702_s26 = smov 0   ;;  %s704_s27 = smov 0  }
  0x12 LB: > { %s400_s0 = sadd.s32 4294967295, %s654_s27   ;;  %s401_s28 = sadd.s32 4294967294, %s654_s27   ;;  %s654_s27 = sphi %s704_s27, %s22_s27   ;;  %s650_s26 = sphi %s702_s26, %s934_s26   ;;  %s646_s25 = sphi %s700_s25, %s933_s25   ;;  %s642_s24 = sphi %s698_s24, %s932_s24   ;;  %s638_s23 = sphi %s696_s23, %s931_s23   ;;  %s634_s22 = sphi %s694_s22, %s930_s22  }
  0x13   : > { %s34_s29 = sadd.s32 1, %s650_s26  ;;  %s90_s30 = sadd.s32 1, %s642_s24 }
  0x14   : > { %p36_p3 = scmp.ge.s32.totalorder %s34_s29, 2  ;;  %p100_p4 = scmp.ne.s32.totalorder %s642_s24, %s638_s23 }
  0x15   : > { %p101_p5 = scmp.eq.s32.totalorder %s400_s0, 1  ;;  %p106_p6 = scmp.ne.s32.totalorder %s638_s23, %s634_s22 }
  0x16   : > { %s936_s29 = smov (%p36_p3, %s34_s29), 0  ;;  %p107_p8 = scmp.eq.s32.totalorder %s401_s28, 1 }
  0x17   : > { %p734_p7 = por %p101_p5, %p100_p4  ;;  %s85_s5 = ssub.s32 %s650_s26, %s936_s29 }
  0x18   : > { %p402_p9 = scmp.ge.s32.totalorder %s654_s27, 1  ;;  %p88_p10 = scmp.eq.s32.totalorder %s85_s5, 0 }
  0x19   : > { %s921_s4 = scalar_select %p734_p7, 1, 0 }
  0x1a   : > { %p741_p11 = por %p107_p8, %p106_p6  ;;  %p114_p12 = scmp.lt.s32.totalorder %s654_s27, 3 }
  0x1b   : > { %s747_s7 = scalar_select %p88_p10, %s642_s24, %s90_s30  }
  0x1c   : > { %s922_s6 = scalar_select %p741_p11, 1, 0 }
  0x1d   : > { %p749_p13 = pnand %p402_p9, %p114_p12  ;;  %p753_p0 = scmp.eq.s32.totalorder %s400_s0, 0 }
  0x1e   : > { %s657_s10 = smov [#allocation4]   ;;  %s658_s13 = smov [#allocation7]  }
  0x1f   : > { %s923_s8 = scalar_select %p749_p13, 1, 0 }
  0x20   : > { %s924_s9 = scalar_select %p753_p0, 1, 0 }
  0x21   : > { %p431_p1 = pneg %p749_p13  ;;  %s126_s11 = sshll.u32 %s657_s10, 4  ;;  %s127_s11 = int_to_ptr.vmem [resolvable:$true] %s126_s11 }
  0x22   : > { %s142_s14 = sshll.u32 %s658_s13, 4  ;;  %s510_s17 = scalar_lea.hbm %s914_s1, 512  ;;  %s765_s14 = int_to_ptr.vmem [resolvable:$true] %s142_s14 }
  0x23   : > { %p761_p2 = pnand %p753_p0, %p431_p1  ;;  %p511_p3 = scmp.ne.s32.totalorder %s914_s1, %s510_s17 }
  0x24   : > { %p517_p8 = scmp.lt.u32.totalorder %s510_s17, %s914_s1 }
  0x25   : > { %p512_p4 = pneg %p761_p2 }
  0x27   : > { %p513_p5 = pnand %p512_p4, %p511_p3 }
  0x29   : > { %p514_p6 = pneg %p513_p5 }
  0x2b   : > { %p519_p9 = pnand %p517_p8, %p514_p6 }
  0x2d   : > { %522 = shalt.err (!%p519_p9)
}
  0x2e   : > { %s523_s0 = scalar_lea.vmem %s127_s11, 512  ;;  %p531_p11 = scmp.lt.s32.totalorder %s127_s11, %s127_s11 }
  0x2f   : > { %p524_p10 = scmp.ne.s32.totalorder %s127_s11, %s523_s0  ;;  %p532_p7 = scmp.lt.s32.totalorder %s523_s0, %s523_s0 }
  0x31   : > { %p526_p12 = pnand %p524_p10, %p512_p4  ;;  %p533_p0 = por %p532_p7, %p531_p11 }
  0x33   : > { %p527_p1 = pneg %p526_p12 }
  0x35   : > { %p534_p13 = pnand %p533_p0, %p527_p1 }
  0x37   : > { %537 = shalt.err (!%p534_p13)
}
  0x38   : > { %s659_s28 = smov 128   ;;  %s660_s30 = smov 8  }
  0x39   : > { %434 = dma.hbm_to_vmem [thread:$0]  (!%p761_p2), %s914_s1, 512, %s127_s11, [#allocation5], %s659_s28, %s659_s28, %s660_s30  }
  0x3a   : > { %s538_s16 = scalar_lea.hbm %s915_s2, 128 }
  0x3b   : > { %p539_p3 = scmp.ne.s32.totalorder %s915_s2, %s538_s16  ;;  %p545_p13 = scmp.lt.u32.totalorder %s538_s16, %s915_s2 }
  0x3d   : > { %p541_p7 = pnand %p539_p3, %p512_p4 }
  0x3f   : > { %p542_p11 = pneg %p541_p7 }
  0x41   : > { %p547_p0 = pnand %p545_p13, %p542_p11 }
  0x43   : > { %550 = shalt.err (!%p547_p0)
}
  0x44   : > { %s551_s11 = scalar_lea.vmem %s765_s14, 128  ;;  %p559_p9 = scmp.lt.s32.totalorder %s765_s14, %s765_s14 }
  0x45   : > { %p552_p5 = scmp.ne.s32.totalorder %s765_s14, %s551_s11  ;;  %p560_p10 = scmp.lt.s32.totalorder %s551_s11, %s551_s11 }
  0x47   : > { %p554_p6 = pnand %p552_p5, %p512_p4  ;;  %p561_p12 = por %p560_p10, %p559_p9 }
  0x49   : > { %p555_p8 = pneg %p554_p6 }
  0x4b   : > { %p562_p1 = pnand %p561_p12, %p555_p8 }
  0x4d   : > { %565 = shalt.err (!%p562_p1)
}
  0x4e   : > { %437 = dma.hbm_to_vmem [thread:$0]  (!%p761_p2), %s915_s2, 128, %s765_s14, [#allocation8]  }
  0x4f   : > { %p926_p3 = scmp.ne.s32.totalorder %s923_s8, 0 }
  0x50   : > { %p927_p7 = scmp.ne.s32.totalorder (!%p926_p3), %s924_s9, 0 }
  0x51   : > { %155 = sbr.rel (%p926_p3) target bundleno = 131 (0x83), region = 28 }
  0x58   : > { %621 = dma.done.wait (%p927_p7), [#allocation5], 512  }
  0x59   : > { %623 = vsyncadd (%p927_p7), [#allocation5], 4294966784 }
  0x5a   : > { %625 = dma.done.wait (%p927_p7), [#allocation8], 128  }
  0x5b   : > { %627 = vsyncadd (%p927_p7), [#allocation8], 4294967168  ;;  %s173_s12 = sand.u32 1, %s638_s23   ;;  %s826_s14 = sshll.u32 %s646_s25, 7  ;;  %v188_v1 = vld [vmem:[#allocation7] sm:$0x1] }
  0x5c   : > { %s184_s8 = sld [smem:[#allocation3 + %s826_s14]]  ;;  %s408_s28 = sshll.u32 %s173_s12, 3  ;;  %vm190_vm0 = vcmask 253952   ;;  %v204_v3 = vld [vmem:[#allocation7 + $0x1] sm:$0x1] }
  0x5d   : > { %s199_s30 = sadd.s32 1, %s826_s14  ;;  %s214_s5 = sadd.s32 2, %s826_s14  ;;  %v219_v4 = vld [vmem:[#allocation7 + $0x2] sm:$0x1]  ;;  %v234_v8 = vld [vmem:[#allocation7 + $0x3] sm:$0x1] }
  0x5e   : > { %s200_s9 = sld [smem:[#allocation3 + %s199_s30]]  ;;  %s229_s13 = sadd.s32 3, %s826_s14  ;;  %v249_v9 = vld [vmem:[#allocation7 + $0x4] sm:$0x1]  ;;  %v264_v21 = vld [vmem:[#allocation7 + $0x5] sm:$0x1] }
  0x5f   : > { %s215_s10 = sld [smem:[#allocation3 + %s214_s5]]  ;;  %s244_s15 = sadd.s32 4, %s826_s14  ;;  %v279_v24 = vld [vmem:[#allocation7 + $0x6] sm:$0x1]  ;;  %v294_v28 = vld [vmem:[#allocation7 + $0x7] sm:$0x1] }
  0x60   : > { %s230_s16 = sld [smem:[#allocation3 + %s229_s13]]  ;;  %s259_s25 = sadd.s32 5, %s826_s14 }
  0x61   : > { %s245_s17 = sld [smem:[#allocation3 + %s244_s15]]  ;;  %s274_s20 = sadd.s32 6, %s826_s14 }
  0x62   : > { %s185_s18 = scalar_lea.vmem [#allocation4], %s184_s8  ;;  %s836_s19 = sld [smem:[#allocation3 + %s259_s25]] }
  0x63   : > { %v186_v0 = vld [vmem:[%s185_s18] sm:$0x1]  ;;  %s275_s0 = sld [smem:[#allocation3 + %s274_s20]]  ;;  %s289_s30 = sadd.s32 7, %s826_s14 }
  0x64   : > { %v187_v2 = vmul.f32 5.656854, %v186_v0  ;;  %s201_s11 = scalar_lea.vmem [#allocation4], %s200_s9  ;;  %s840_s8 = scalar_lea.vmem [#allocation9], %s408_s28 }
  0x65   : > { %v202_v6 = vld [vmem:[%s201_s11] sm:$0x1]  ;;  %s216_s21 = scalar_lea.vmem [#allocation4], %s215_s10  ;;  %s290_s10 = sld [smem:[#allocation3 + %s289_s30]] }
  0x66   : > { %v189_v5 = vadd.f32 %v188_v1, %v187_v2  ;;  %v217_v7 = vld [vmem:[%s216_s21] sm:$0x1]  ;;  %v203_v10 = vmul.f32 5.656854, %v202_v6  ;;  %s231_s5 = scalar_lea.vmem [#allocation4], %s230_s16  ;;  %s312_s16 = sshll.u32 %s840_s8, 4  ;;  %s864_s16 = int_to_ptr.vmem [resolvable:$true] %s312_s16 }
  0x67   : > { %v218_v11 = vmul.f32 5.656854, %v217_v7  ;;  %v232_v12 = vld [vmem:[%s231_s5] sm:$0x1]  ;;  %s246_s9 = scalar_lea.vmem [#allocation4], %s245_s17  ;;  %s862_s18 = scalar_lea.hbm %s916_s3, %s826_s14 }
  0x68   : > { %191 = vst.msk [vmem:[%s840_s8] sm:$0x1] %vm190_vm0, %v189_v5  ;;  %v247_v13 = vld [vmem:[%s246_s9] sm:$0x1]  ;;  %v205_v14 = vadd.f32 %v204_v3, %v203_v10  ;;  %v233_v16 = vmul.f32 5.656854, %v232_v12 }
  0x69   : > { %v220_v15 = vadd.f32 %v219_v4, %v218_v11  ;;  %v248_v17 = vmul.f32 5.656854, %v247_v13  ;;  %s261_s28 = scalar_lea.vmem [#allocation4], %s836_s19  ;;  %s276_s13 = scalar_lea.vmem [#allocation4], %s275_s0 }
  0x6a   : > { %206 = vst.msk [vmem:[%s840_s8 + $0x1] sm:$0x1] %vm190_vm0, %v205_v14  ;;  %v235_v18 = vadd.f32 %v234_v8, %v233_v16  ;;  %v262_v20 = vld [vmem:[%s261_s28] sm:$0x1]  ;;  %s298_s19 = scalar_lea.sflag [#allocation6], %s173_s12  ;;  %s566_s20 = scalar_lea.vmem %s864_s16, 128 }
  0x6b   : > { %221 = vst.msk [vmem:[%s840_s8 + $0x2] sm:$0x1] %vm190_vm0, %v220_v15  ;;  %v250_v19 = vadd.f32 %v249_v9, %v248_v17  ;;  %v263_v22 = vmul.f32 5.656854, %v262_v20  ;;  %v277_v23 = vld [vmem:[%s276_s13] sm:$0x1]  ;;  %p567_p2 = scmp.ne.s32.totalorder %s864_s16, %s566_s20 }
  0x6c   : > { %236 = vst.msk [vmem:[%s840_s8 + $0x3] sm:$0x1] %vm190_vm0, %v235_v18  ;;  %v278_v26 = vmul.f32 5.656854, %v277_v23  ;;  %s291_s15 = scalar_lea.vmem [#allocation4], %s290_s10  ;;  %p928_p4 = scmp.ne.s32.totalorder %s921_s4, 0 }
  0x6d   : > { %251 = vst.msk [vmem:[%s840_s8 + $0x4] sm:$0x1] %vm190_vm0, %v250_v19  ;;  %v265_v25 = vadd.f32 %v264_v21, %v263_v22  ;;  %v292_v27 = vld [vmem:[%s291_s15] sm:$0x1]  ;;  %s661_s11 = smov [#allocation9]  }
  0x6e   : > { %v280_v29 = vadd.f32 %v279_v24, %v278_v26  ;;  %v293_v30 = vmul.f32 5.656854, %v292_v27  ;;  %p568_p11 = pnand %p567_p2, %p928_p4  ;;  %s570_s21 = sshll.u32 %s661_s11, 4  ;;  %s571_s21 = int_to_ptr.vmem [resolvable:$false] %s570_s21 }
  0x6f   : > { %266 = vst.msk [vmem:[%s840_s8 + $0x5] sm:$0x1] %vm190_vm0, %v265_v25  ;;  %s572_s0 = scalar_lea.vmem %s571_s21, 256  ;;  %p573_p0 = scmp.lt.s32.totalorder %s864_s16, %s571_s21 }
  0x70   : > { %281 = vst.msk [vmem:[%s840_s8 + $0x6] sm:$0x1] %vm190_vm0, %v280_v29  ;;  %v295_v31 = vadd.f32 %v294_v28, %v293_v30  ;;  %p569_p13 = pneg %p568_p11  ;;  %p574_p5 = scmp.lt.s32.totalorder %s572_s0, %s566_s20 }
  0x72   : > { %296 = vst.msk [vmem:[%s840_s8 + $0x7] sm:$0x1] %vm190_vm0, %v295_v31  ;;  %p575_p6 = por %p574_p5, %p573_p0 }
  0x74   : > { %p576_p8 = pnand %p575_p6, %p569_p13 }
  0x76   : > { %579 = shalt.err (!%p576_p8)
}
  0x77   : > { %s580_s12 = scalar_lea.hbm %s862_s18, 128  ;;  %s584_s8 = scalar_lea.hbm %s916_s3, 256 }
  0x78   : > { %p581_p9 = scmp.ne.s32.totalorder %s862_s18, %s580_s12  ;;  %p585_p1 = scmp.lt.u32.totalorder %s862_s18, %s916_s3 }
  0x79   : > { %p586_p3 = scmp.lt.u32.totalorder %s584_s8, %s580_s12  ;;  %p588_p2 = scmp.lt.u32.totalorder %s580_s12, %s862_s18 }
  0x7a   : > { %p582_p10 = pnand %p581_p9, %p928_p4 }
  0x7b   : > { %p587_p7 = por %p586_p3, %p585_p1 }
  0x7c   : > { %p583_p12 = pneg %p582_p10 }
  0x7d   : > { %p589_p11 = por %p588_p2, %p587_p7 }
  0x7f   : > { %p590_p13 = pnand %p589_p11, %p583_p12 }
  0x81   : > { %593 = shalt.err (!%p590_p13)
}
  0x82   : > { %429 = dma.vmem_to_hbm [thread:$0]  (%p928_p4), %s864_s16, 128, %s862_s18, %s298_s19  }
  0x83 PF: > { %p446_p0 = scmp.ge.s32.totalorder %s654_s27, 2  ;;  %s324_s10 = sand.u32 1, %s634_s22  }
  0x84   : > { %p929_p5 = scmp.ne.s32.totalorder %s922_s6, 0  ;;  %s325_s28 = scalar_lea.sflag [#allocation6], %s324_s10 }
  0x86   : > { %p439_p6 = pnand %p446_p0, %p929_p5 }
  0x88   : > { %629 = dma.done.wait (!%p439_p6), %s325_s28, 128  }
  0x89   : > { %631 = vsyncadd (!%p439_p6), %s325_s28, 4294967168  ;;  %s22_s27 = sadd.s32 1, %s654_s27   ;;  %s930_s22 = smov %s638_s23 }
  0x8a   : > { %p19_p8 = scmp.ge.s32.totalorder %s22_s27, 4   ;;  %s931_s23 = smov %s642_s24 }
  0x8b   : > { %s932_s24 = smov %s747_s7  ;;  %s933_s25 = smov %s650_s26 }
  0x8c   : > { %s934_s26 = smov %s936_s29  ;;  %21 = sbr.rel (!%p19_p8) target bundleno = 18 (0x12), region = 78 }
  0x93   :  { %330 = vsyncpa [#allocation5], 1 }
  0x94   :  { %332 = vsyncpa [#allocation5 + $0x1], 1 }
  0x95   :  { %333 = vsyncpa [#allocation8], 1 }
  0x96   :  { %334 = vsyncpa [#allocation6], 1 }
  0x97   :  { %336 = vsyncpa [#allocation6 + $0x1], 1 }

</bundles_post_ra>
